<compile_context>
chip_gen: v7x
topology: tpu7x:2x2x1
jax: 0.10.0
libtpu: 0.0.40
codegen_flags: <defaults>
</compile_context>

<pallas_src>
import functools

import jax
import jax.numpy as jnp
from jax.experimental import pallas as pl
from jax.experimental.pallas import tpu as pltpu


def _round_up(x, m):
    return (x + m - 1) // m * m


_VMEM_FALLBACK = 64 * 1024 * 1024  # conservative (v7x per-TC) if query fails


def _vmem_capacity():
    try:
        info = pltpu.get_tpu_info()
        cap = int(getattr(info, "vmem_capacity_bytes", 0) or 0)
        if cap > 0:
            return cap
    except Exception:
        pass
    return _VMEM_FALLBACK


def _expert_kernel(x_ref, w1_ref, b1_ref, w2_ref, b2_ref, o_ref, acc_ref, *,
                   compute_dtype):
    """One (batch, out, hidden) grid step of Linear -> ReLU -> Linear.

    Grid = (n_b, n_o, n_h).  The hidden axis (last, "arbitrary") is the
    reduction axis of the second matmul; the (tile_b, tile_o) output block
    stays resident across it and accumulates into a f32 VMEM scratch.
    """
    j = pl.program_id(2)

    @pl.when(j == 0)
    def _init():
        acc_ref[...] = jnp.zeros_like(acc_ref)

    # In-kernel cast of the x tile (VPU work hidden under the MXU); x stays in
    # its original dtype in HBM so it is only read once at full width.
    x = x_ref[...].astype(compute_dtype)
    # First matmul slice on the MXU: (tile_b, D_in) @ (D_in, tile_h) -> f32.
    h = jnp.dot(x, w1_ref[...], preferred_element_type=jnp.float32)
    # Bias + ReLU in f32 on the VPU (elementwise -> exact per hidden slice).
    h = jnp.maximum(h + b1_ref[...], 0.0)
    # Cast right before the second dot so the f32 live range stays short.
    acc_ref[...] += jnp.dot(h.astype(w2_ref.dtype), w2_ref[...],
                            preferred_element_type=jnp.float32)

    @pl.when(j == pl.num_programs(2) - 1)
    def _finalize():
        o_ref[...] = (acc_ref[...] + b2_ref[...]).astype(o_ref.dtype)


class PallasExpert:
    """Fused Linear -> ReLU -> Linear with weights prepared (padded/cast) once."""

    def __init__(self, w1, b1, w2, b2, *, compute_dtype=jnp.bfloat16,
                 tile_h=None, tile_o=None, tile_b=None):
        w1 = jnp.asarray(w1)
        b1 = jnp.asarray(b1)
        w2 = jnp.asarray(w2)
        b2 = jnp.asarray(b2)
        D_in, H = w1.shape
        H2, O = w2.shape
        assert H2 == H and b1.shape == (H,) and b2.shape == (O,)
        self.D_in, self.H, self.O = D_in, H, O
        self.cdt = jnp.dtype(compute_dtype)
        self.tile_b_override = tile_b

        cs = self.cdt.itemsize
        cap = _vmem_capacity()
        # Generation-aware budget: ~102 MiB on 128 MiB chips, ~51 MiB on v7x.
        self.vmem_budget = int(cap * 0.8)
        weight_budget = self.vmem_budget // 2

        H_pad = _round_up(H, 128)
        O_pad = _round_up(O, 128)

        def wbytes(th, to):
            # Double-buffered weight + bias slices resident in VMEM.
            return 2 * (D_in * th + th * to) * cs + 2 * (th + to) * 4

        auto_h = tile_h is None
        auto_o = tile_o is None
        th = H_pad if auto_h else _round_up(min(int(tile_h), H_pad), 128)
        to = O_pad if auto_o else _round_up(min(int(tile_o), O_pad), 128)
        # Only tile when the fully-resident weights do not fit; shrink the
        # output axis first (keeps dot1's N width full), then the hidden axis.
        while auto_o and to > 128 and wbytes(th, to) > weight_budget:
            to = max(128, _round_up(to // 2, 128))
        while auto_h and th > 128 and wbytes(th, to) > weight_budget:
            th = max(128, _round_up(th // 2, 128))

        # Divisibility via padding (zero padding is inert for this network).
        H_pad = _round_up(H_pad, th)
        O_pad = _round_up(O_pad, to)
        self.tile_h, self.tile_o = th, to
        self.H_pad, self.O_pad = H_pad, O_pad
        self.n_h = H_pad // th
        self.n_o = O_pad // to
        self._weight_vmem_bytes = wbytes(th, to)

        # Prepare (pad + cast) weights ONCE; kernel is the only consumer of
        # weight HBM bandwidth afterwards.
        self.w1p = jnp.pad(w1, ((0, 0), (0, H_pad - H))).astype(self.cdt)
        self.w2p = jnp.pad(w2, ((0, H_pad - H), (0, O_pad - O))).astype(self.cdt)
        self.b1p = jnp.pad(b1, (0, H_pad - H)).astype(jnp.float32).reshape(1, H_pad)
        self.b2p = jnp.pad(b2, (0, O_pad - O)).astype(jnp.float32).reshape(1, O_pad)

    def __call__(self, x):
        x = jnp.asarray(x)
        assert x.shape[-1] == self.D_in
        lead = x.shape[:-1]
        out2 = self._forward_2d(x.reshape(-1, self.D_in))
        return out2.reshape(*lead, self.O)

    def _forward_2d(self, x):
        B, D_in = x.shape
        out_dtype = x.dtype
        xs = jnp.dtype(x.dtype).itemsize
        os_ = jnp.dtype(out_dtype).itemsize
        cs = self.cdt.itemsize
        th, to = self.tile_h, self.tile_o
        n_h, n_o = self.n_h, self.n_o

        # Packed-sublane multiple of the compute dtype (bf16 packs (16,128)).
        sub = 16 if cs == 2 else (32 if cs == 1 else 8)

        # Grow tile_b into whatever VMEM remains after the weight slices.
        rem = max(self.vmem_budget - self._weight_vmem_bytes, 2 << 20)
        per_row = (2 * D_in * xs          # x tile (double-buffered, orig dtype)
                   + 2 * to * os_         # out tile (double-buffered)
                   + to * 4               # f32 accumulator scratch
                   + th * 4)              # f32 intermediate h
        if self.tile_b_override is None:
            tile_b = max(sub, (rem // per_row) // sub * sub)
            tile_b = min(tile_b, 1024)
        else:
            tile_b = _round_up(int(self.tile_b_override), sub)
        tile_b = min(tile_b, _round_up(B, sub))
        B_pad = _round_up(B, tile_b)
        n_b = B_pad // tile_b

        xp = x if B_pad == B else jnp.pad(x, ((0, B_pad - B), (0, 0)))

        vmem_est = self._weight_vmem_bytes + tile_b * per_row
        cap = _vmem_capacity()
        vmem_limit = min(int(cap * 0.9),
                         max(32 << 20, int(1.25 * vmem_est) + (4 << 20)))

        # Cost hint: account for weight re-fetch whenever tiling forces it.
        w1_traffic = self.w1p.size * cs * (n_b * n_o if n_h > 1 else 1)
        w2_traffic = self.w2p.size * cs * (n_b if (n_h > 1 or n_o > 1) else 1)
        cost = pl.CostEstimate(
            flops=2 * B_pad * (D_in * self.H_pad + self.H_pad * self.O_pad),
            transcendentals=0,
            bytes_accessed=int(xp.size * xs + w1_traffic + w2_traffic
                               + (self.b1p.size + self.b2p.size) * 4
                               + B_pad * self.O_pad * os_),
        )

        kernel = functools.partial(_expert_kernel, compute_dtype=self.cdt)

        out_padded = pl.pallas_call(
            kernel,
            out_shape=jax.ShapeDtypeStruct((B_pad, self.O_pad), out_dtype),
            grid_spec=pltpu.PrefetchScalarGridSpec(
                num_scalar_prefetch=0,
                grid=(n_b, n_o, n_h),
                in_specs=[
                    pl.BlockSpec((tile_b, D_in), lambda i, o, j: (i, 0)),  # x
                    pl.BlockSpec((D_in, th), lambda i, o, j: (0, j)),      # w1
                    pl.BlockSpec((1, th), lambda i, o, j: (0, j)),         # b1
                    pl.BlockSpec((th, to), lambda i, o, j: (j, o)),        # w2
                    pl.BlockSpec((1, to), lambda i, o, j: (0, o)),         # b2
                ],
                out_specs=pl.BlockSpec((tile_b, to), lambda i, o, j: (i, o)),
                scratch_shapes=[pltpu.VMEM((tile_b, to), jnp.float32)],
            ),
            compiler_params=pltpu.CompilerParams(
                dimension_semantics=("parallel", "parallel", "arbitrary"),
                vmem_limit_bytes=vmem_limit),
            cost_estimate=cost,
        )(xp, self.w1p, self.b1p, self.w2p, self.b2p)

        return out_padded[:B, :self.O]


def init_expert_params(key, input_dim, hidden_dim, output_dim, dtype=jnp.float32):
    """Deterministic init mimicking nn.Linear's uniform(-1/sqrt(fan_in), ...)."""
    k1, k2, k3, k4 = jax.random.split(key, 4)
    lim1 = 1.0 / jnp.sqrt(input_dim)
    lim2 = 1.0 / jnp.sqrt(hidden_dim)
    # Stored already transposed: (in, out), so forward is x @ w + b.
    w1 = jax.random.uniform(k1, (input_dim, hidden_dim), dtype, -lim1, lim1)
    b1 = jax.random.uniform(k2, (hidden_dim,), dtype, -lim1, lim1)
    w2 = jax.random.uniform(k3, (hidden_dim, output_dim), dtype, -lim2, lim2)
    b2 = jax.random.uniform(k4, (output_dim,), dtype, -lim2, lim2)
    return w1, b1, w2, b2


def _reference(x, w1, b1, w2, b2):
    return jnp.maximum(x @ w1 + b1, 0.0) @ w2 + b2


if __name__ == "__main__":
    key = jax.random.PRNGKey(0)

    # --- test 1: f32 compute, resident weights (n_h = n_o = 1) --------------
    kx, kp, key = jax.random.split(key, 3)
    in_d, hid_d, out_d, batch = 32, 64, 16, 64
    x = jax.random.normal(kx, (batch, in_d), jnp.float32)
    w1, b1, w2, b2 = init_expert_params(kp, in_d, hid_d, out_d)
    expert_f32 = PallasExpert(w1, b1, w2, b2, compute_dtype=jnp.float32)
    out = jax.block_until_ready(expert_f32(x))
    ref = _reference(x, w1, b1, w2, b2)
    assert out.shape == (batch, out_d)
    assert jnp.allclose(out, ref, atol=1e-3, rtol=1e-3), "f32 mismatch vs reference"

    # --- test 2: default bf16 compute, ragged batch, hidden-axis tiling -----
    kx, kp, key = jax.random.split(key, 3)
    in_d, hid_d, out_d, batch = 32, 256, 16, 200   # ragged -> batch pad/slice
    x = jax.random.normal(kx, (batch, in_d), jnp.float32)
    w1, b1, w2, b2 = init_expert_params(kp, in_d, hid_d, out_d)
    expert_bf16 = PallasExpert(w1, b1, w2, b2, tile_h=128, tile_b=64)  # n_h = 2
    out_bf16 = jax.block_until_ready(expert_bf16(x))
    ref = _reference(x, w1, b1, w2, b2)
    assert out_bf16.shape == (batch, out_d)
    assert jnp.allclose(out_bf16, ref, atol=0.1, rtol=0.05), "bf16 mismatch vs reference"

    # --- test 3: f32 compute, output-axis tiling (n_o = 3) ------------------
    kx, kp, key = jax.random.split(key, 3)
    in_d, hid_d, out_d, batch = 32, 128, 384, 64
    x = jax.random.normal(kx, (batch, in_d), jnp.float32)
    w1, b1, w2, b2 = init_expert_params(kp, in_d, hid_d, out_d)
    expert_otile = PallasExpert(w1, b1, w2, b2, compute_dtype=jnp.float32,
                                tile_o=128)
    out_o = jax.block_until_ready(expert_otile(x))
    ref = _reference(x, w1, b1, w2, b2)
    assert out_o.shape == (batch, out_d)
    assert jnp.allclose(out_o, ref, atol=1e-3, rtol=1e-3), "O-tiled mismatch vs reference"

    print("KERNEL_OK")
</pallas_src>

<mosaic_0001>
module attributes {stable_mosaic.version = 11 : i64} {
  func.func @_expert_kernel(%arg0: i32, %arg1: i32, %arg2: i32, %arg3: memref<64x32xf32, #tpu.memory_space<vmem>>, %arg4: memref<32x128xf32, #tpu.memory_space<vmem>>, %arg5: memref<1x128xf32, #tpu.memory_space<vmem>>, %arg6: memref<128x128xf32, #tpu.memory_space<vmem>>, %arg7: memref<1x128xf32, #tpu.memory_space<vmem>>, %arg8: memref<64x128xf32, #tpu.memory_space<vmem>>, %arg9: memref<64x128xf32, #tpu.memory_space<vmem>>) attributes {dimension_semantics = [#tpu.dimension_semantics<parallel>, #tpu.dimension_semantics<parallel>, #tpu.dimension_semantics<arbitrary>], iteration_bounds = array<i64: 1, 1, 1>, scalar_prefetch = 0 : i64, scratch_operands = 1 : i64, tpu.core_type = #tpu.core_type<tc>, window_params = [{transform_indices = @transform_0, window_bounds = array<i64: 64, 32>}, {transform_indices = @transform_1, window_bounds = array<i64: 32, 128>}, {transform_indices = @transform_2, window_bounds = array<i64: 1, 128>}, {transform_indices = @transform_3, window_bounds = array<i64: 128, 128>}, {transform_indices = @transform_4, window_bounds = array<i64: 1, 128>}, {transform_indices = @transform_5, window_bounds = array<i64: 64, 128>}]} {
    %c0_i32 = arith.constant 0 : i32
    %0 = arith.cmpi eq, %arg2, %c0_i32 : i32
    %1 = arith.extui %0 : i1 to i32
    %c0_i32_0 = arith.constant 0 : i32
    %2 = arith.cmpi ne, %1, %c0_i32_0 : i32
    scf.if %2 {
      %cst_16 = arith.constant 0.000000e+00 : f32
      %19 = vector.broadcast %cst_16 : f32 to vector<64x128xf32>
      %c0_17 = arith.constant 0 : index
      %c0_18 = arith.constant 0 : index
      %20 = vector.load %arg9[%c0_17, %c0_18] : memref<64x128xf32, #tpu.memory_space<vmem>>, vector<64x128xf32>
      tpu.vector_store %arg9[%c0_17, %c0_18], %19 {strides = array<i32>} : memref<64x128xf32, #tpu.memory_space<vmem>>, vector<64x128xf32>,
    } else {
    }
    %c0 = arith.constant 0 : index
    %c0_1 = arith.constant 0 : index
    %3 = vector.load %arg3[%c0, %c0_1] : memref<64x32xf32, #tpu.memory_space<vmem>>, vector<64x32xf32>
    %c0_2 = arith.constant 0 : index
    %c0_3 = arith.constant 0 : index
    %4 = vector.load %arg4[%c0_2, %c0_3] : memref<32x128xf32, #tpu.memory_space<vmem>>, vector<32x128xf32>
    %cst = arith.constant dense<0.000000e+00> : vector<64x128xf32>
    %5 = tpu.matmul %3, %4, %cst {dimension_numbers = #tpu.dot_dimension_numbers<[1], [0], [0], [1], [0, 0, 1, 1], [], []>} : vector<64x32xf32>, vector<32x128xf32>, vector<64x128xf32> -> vector<64x128xf32>
    %c0_4 = arith.constant 0 : index
    %c0_5 = arith.constant 0 : index
    %6 = vector.load %arg5[%c0_4, %c0_5] : memref<1x128xf32, #tpu.memory_space<vmem>>, vector<1x128xf32>
    %7 = vector.broadcast %6 : vector<1x128xf32> to vector<64x128xf32>
    %8 = arith.addf %5, %7 : vector<64x128xf32>
    %cst_6 = arith.constant 0.000000e+00 : f32
    %9 = vector.broadcast %cst_6 : f32 to vector<64x128xf32>
    %10 = arith.maximumf %8, %9 : vector<64x128xf32>
    %c0_7 = arith.constant 0 : index
    %c0_8 = arith.constant 0 : index
    %11 = vector.load %arg9[%c0_7, %c0_8] : memref<64x128xf32, #tpu.memory_space<vmem>>, vector<64x128xf32>
    %c0_9 = arith.constant 0 : index
    %c0_10 = arith.constant 0 : index
    %12 = vector.load %arg6[%c0_9, %c0_10] : memref<128x128xf32, #tpu.memory_space<vmem>>, vector<128x128xf32>
    %cst_11 = arith.constant dense<0.000000e+00> : vector<64x128xf32>
    %13 = tpu.matmul %10, %12, %cst_11 {dimension_numbers = #tpu.dot_dimension_numbers<[1], [0], [0], [1], [0, 0, 1, 1], [], []>} : vector<64x128xf32>, vector<128x128xf32>, vector<64x128xf32> -> vector<64x128xf32>
    %14 = arith.addf %11, %13 : vector<64x128xf32>
    %c0_12 = arith.constant 0 : index
    %c0_13 = arith.constant 0 : index
    %15 = vector.load %arg9[%c0_12, %c0_13] : memref<64x128xf32, #tpu.memory_space<vmem>>, vector<64x128xf32>
    tpu.vector_store %arg9[%c0_12, %c0_13], %14 {strides = array<i32>} : memref<64x128xf32, #tpu.memory_space<vmem>>, vector<64x128xf32>,
    %c0_i32_14 = arith.constant 0 : i32
    %16 = arith.cmpi eq, %arg2, %c0_i32_14 : i32
    %17 = arith.extui %16 : i1 to i32
    %c0_i32_15 = arith.constant 0 : i32
    %18 = arith.cmpi ne, %17, %c0_i32_15 : i32
    scf.if %18 {
      %c0_16 = arith.constant 0 : index
      %c0_17 = arith.constant 0 : index
      %19 = vector.load %arg9[%c0_16, %c0_17] : memref<64x128xf32, #tpu.memory_space<vmem>>, vector<64x128xf32>
      %c0_18 = arith.constant 0 : index
      %c0_19 = arith.constant 0 : index
      %20 = vector.load %arg7[%c0_18, %c0_19] : memref<1x128xf32, #tpu.memory_space<vmem>>, vector<1x128xf32>
      %21 = vector.broadcast %20 : vector<1x128xf32> to vector<64x128xf32>
      %22 = arith.addf %19, %21 : vector<64x128xf32>
      %c0_20 = arith.constant 0 : index
      %c0_21 = arith.constant 0 : index
      %23 = vector.load %arg8[%c0_20, %c0_21] : memref<64x128xf32, #tpu.memory_space<vmem>>, vector<64x128xf32>
      tpu.vector_store %arg8[%c0_20, %c0_21], %22 {strides = array<i32>} : memref<64x128xf32, #tpu.memory_space<vmem>>, vector<64x128xf32>,
    } else {
    }
    return
  }
  func.func @transform_0(%arg0: i32, %arg1: i32, %arg2: i32) -> (i32, i32) {
    %c0_i32 = arith.constant 0 : i32
    %c0_i32_0 = arith.constant 0 : i32
    return %arg0, %c0_i32 : i32, i32
  }
  func.func @transform_1(%arg0: i32, %arg1: i32, %arg2: i32) -> (i32, i32) {
    %c0_i32 = arith.constant 0 : i32
    %c0_i32_0 = arith.constant 0 : i32
    return %c0_i32, %arg2 : i32, i32
  }
  func.func @transform_2(%arg0: i32, %arg1: i32, %arg2: i32) -> (i32, i32) {
    %c0_i32 = arith.constant 0 : i32
    %c0_i32_0 = arith.constant 0 : i32
    return %c0_i32, %arg2 : i32, i32
  }
  func.func @transform_3(%arg0: i32, %arg1: i32, %arg2: i32) -> (i32, i32) {
    %c0_i32 = arith.constant 0 : i32
    return %arg2, %arg1 : i32, i32
  }
  func.func @transform_4(%arg0: i32, %arg1: i32, %arg2: i32) -> (i32, i32) {
    %c0_i32 = arith.constant 0 : i32
    %c0_i32_0 = arith.constant 0 : i32
    return %c0_i32, %arg1 : i32, i32
  }
  func.func @transform_5(%arg0: i32, %arg1: i32, %arg2: i32) -> (i32, i32) {
    %c0_i32 = arith.constant 0 : i32
    return %arg0, %arg1 : i32, i32
  }
}

</mosaic_0001>

<bundles_post_ra>
// kernel: tpu_custom_call.1
= control target key start
LH: loop header
LB: loop body
LE: loop exit
PB: predicated region body
PF: predicated region fallthrough
CT: control target
= control target key end

     0   :  { %10 = vsyncpa [#allocation4], 0  ;;  %s732_s0 = inlined_call_operand.vmem [shape: f32[64,32], index: 0, kind: input, shape index: {}]   ;;  %s733_s1 = inlined_call_operand.vmem [shape: f32[32,128], index: 1, kind: input, shape index: {}]   ;;  %s734_s2 = inlined_call_operand.vmem [shape: f32[1,128], index: 2, kind: input, shape index: {}]   ;;  %s735_s3 = inlined_call_operand.hbm [shape: f32[128,128], index: 3, kind: input, shape index: {}]   ;;  %s736_s4 = inlined_call_operand.vmem [shape: f32[1,128], index: 4, kind: input, shape index: {}]   ;;  %s737_s5 = inlined_call_operand.hbm [shape: f32[64,128], index: 5, kind: output, shape index: {}]  }
   0x1   :  { %11 = vsyncpa [#allocation5], 0  ;;  %s618_s18 = smov [#allocation3]   ;;  %s570_s22 = scalar_lea.hbm %s735_s3, 2048 }
   0x2   :  { %s23_s19 = sshll.u32 %s618_s18, 4  ;;  %p571_p0 = scmp.ne.s32.totalorder %s735_s3, %s570_s22  ;;  %s24_s19 = int_to_ptr.vmem [resolvable:$true] %s23_s19 }
   0x3   :  { %p574_p1 = scmp.lt.u32.totalorder %s570_s22, %s735_s3 }
   0x5   :  { %p576_p2 = pnand %p574_p1, %p571_p0 }
   0x7   :  { %579 = shalt.err (!%p576_p2)
}
   0x8   :  { %s580_s27 = scalar_lea.vmem %s24_s19, 2048  ;;  %p585_p4 = scmp.lt.s32.totalorder %s24_s19, %s24_s19 }
   0x9   :  { %p581_p3 = scmp.ne.s32.totalorder %s24_s19, %s580_s27  ;;  %p586_p5 = scmp.lt.s32.totalorder %s580_s27, %s580_s27 }
   0xb   :  { %p587_p6 = por %p586_p5, %p585_p4 }
   0xd   :  { %p588_p7 = pnand %p587_p6, %p581_p3 }
   0xf   :  { %591 = shalt.err (!%p588_p7)
}
  0x10   :  { %s619_s28 = smov 128   ;;  %s620_s29 = smov 8  }
  0x11   :  { %29 = dma.hbm_to_vmem [thread:$0]  %s735_s3, 2048, %s24_s19, [#allocation4], %s619_s28, %s619_s28, %s620_s29  }
  0x12   :  { %614 = dma.done.wait [#allocation4], 2048  }
  0x13   :  { %615 = vsyncadd [#allocation4], 4294965248  ;;  %vm66_vm0 = vcmask 261120   ;;  %v55_v0 = vld [vmem:[%s733_s1] sm:$0xff]  ;;  %v56_v1 = vld [vmem:[%s733_s1 + $0x8] sm:$0xff]  ;;  %s621_s8 = smov [#allocation6]  }
  0x14   :  { %v57_v2 = vld [vmem:[%s733_s1 + $0x10] sm:$0xff]  ;;  %v510_v3 = vpack.c.bf16 %v56_v1, %v55_v0  ;;  %v58_v4 = vld [vmem:[%s733_s1 + $0x18] sm:$0xff]  ;;  %v47_v5 = vld [vmem:[%s732_s0] sm:$0xff]  ;;  %s388_s9 = sshll.u32 %s621_s8, 4  ;;  %s389_s9 = int_to_ptr.vmem [resolvable:$true] %s388_s9 }
  0x15   :  { %v514_v6 = vpack.c.bf16 %v58_v4, %v57_v2  ;;  %454 = vmatprep.mubr.msk.f32.mxu0 %vm66_vm0, %v47_v5  ;;  %v212_v7 = vld [vmem:[#allocation3] sm:$0xff]  ;;  %v213_v8 = vld [vmem:[#allocation3 + $0x8] sm:$0xff]  ;;  %v214_v9 = vld [vmem:[#allocation3 + $0x10] sm:$0xff]  ;;  %p597_p9 = scmp.lt.s32.totalorder %s389_s9, %s389_s9 }
  0x16   :  { %511 = vmatprep.subr.bf16.mxu0 %v510_v3  ;;  %v518_v10 = vpack.c.bf16 %v213_v8, %v212_v7  ;;  %v215_v11 = vld [vmem:[#allocation3 + $0x18] sm:$0xff]  ;;  %v48_v13 = vld [vmem:[%s732_s0 + $0x8] sm:$0xff]  ;;  %v49_v14 = vld [vmem:[%s732_s0 + $0x10] sm:$0xff] }
  0x17   :  { %513 = vmatpush3.bf16.msra.mxu0 %v510_v3  ;;  %v522_v12 = vpack.c.bf16 %v215_v11, %v214_v9  ;;  %v216_v15 = vld [vmem:[#allocation3 + $0x20] sm:$0xff]  ;;  %v217_v16 = vld [vmem:[#allocation3 + $0x28] sm:$0xff]  ;;  %v50_v17 = vld [vmem:[%s732_s0 + $0x18] sm:$0xff] }
  0x18   :  { %515 = vmatprep.subr.bf16.mxu0 %v514_v6  ;;  %550 = vmatprep.subr.bf16.mxu1 %v518_v10  ;;  %v526_v18 = vpack.c.bf16 %v217_v16, %v216_v15  ;;  %v51_v19 = vld [vmem:[%s732_s0 + $0x20] sm:$0xff]  ;;  %v218_v20 = vld [vmem:[#allocation3 + $0x30] sm:$0xff]  ;;  %v219_v21 = vld [vmem:[#allocation3 + $0x38] sm:$0xff] }
  0x19   :  { %558 = vmatpush3.bf16.msra.mxu1 %v518_v10  ;;  %v52_v22 = vld [vmem:[%s732_s0 + $0x28] sm:$0xff]  ;;  %v530_v23 = vpack.c.bf16 %v219_v21, %v218_v20  ;;  %v53_v24 = vld [vmem:[%s732_s0 + $0x30] sm:$0xff]  ;;  %v220_v25 = vld [vmem:[#allocation3 + $0x40] sm:$0xff] }
  0x1a   :  { %551 = vmatprep.subr.bf16.mxu1 %v522_v12  ;;  %v221_v26 = vld [vmem:[#allocation3 + $0x48] sm:$0xff]  ;;  %v54_v27 = vld [vmem:[%s732_s0 + $0x38] sm:$0xff]  ;;  %v222_v29 = vld [vmem:[#allocation3 + $0x50] sm:$0xff] }
  0x1b   :  { %517 = vmatpush3.bf16.msra.mxu0 %v514_v6  ;;  %v534_v28 = vpack.c.bf16 %v221_v26, %v220_v25  ;;  %v223_v30 = vld [vmem:[#allocation3 + $0x58] sm:$0xff]  ;;  %v224_v32 = vld [vmem:[#allocation3 + $0x60] sm:$0xff]  ;;  %v225_v33 = vld [vmem:[#allocation3 + $0x68] sm:$0xff] }
  0x1c   :  { %519 = vmatprep.subr.bf16.mxu0 %v518_v10  ;;  %v538_v31 = vpack.c.bf16 %v223_v30, %v222_v29  ;;  %v542_v34 = vpack.c.bf16 %v225_v33, %v224_v32  ;;  %v226_v35 = vld [vmem:[#allocation3 + $0x70] sm:$0xff]  ;;  %v227_v36 = vld [vmem:[#allocation3 + $0x78] sm:$0xff]  ;;  %v400_v38 = vld [vmem:[%s734_s2] ss:$0 sm:$0xff] }
  0x1d   :  { %559 = vmatpush3.bf16.msra.mxu1 %v522_v12  ;;  %v546_v37 = vpack.c.bf16 %v227_v36, %v226_v35  ;;  %v409_v63 = vld [vmem:[%s736_s4] ss:$0 sm:$0xff]  ;;  %s592_s4 = scalar_lea.vmem %s389_s9, 1024 }
  0x1e   :  { %455 = vmatmul.mubr.msk.f32.vlgmr.msra.gmra.mrb[0].mxu0 %vm66_vm0, %v48_v13  ;;  %552 = vmatprep.subr.bf16.mxu1 %v526_v18  ;;  %p593_p8 = scmp.ne.s32.totalorder %s389_s9, %s592_s4  ;;  %p598_p10 = scmp.lt.s32.totalorder %s592_s4, %s592_s4 }
  0x1f   :  { %457 = vmatprep.mubr.msk.f32.mxu0 %vm66_vm0, %v49_v14  ;;  %521 = vmatpush3.bf16.msra.mxu0 %v518_v10 }
  0x20   :  { %523 = vmatprep.subr.bf16.mxu0 %v522_v12  ;;  %p599_p11 = por %p598_p10, %p597_p9 }
  0x21   :  { %560 = vmatpush3.bf16.msra.mxu1 %v526_v18 }
  0x22   :  { %458 = vmatmul.mubr.msk.f32.gmra.mrb[2].mxu0 %vm66_vm0, %v50_v17  ;;  %553 = vmatprep.subr.bf16.mxu1 %v530_v23  ;;  %p600_p12 = pnand %p599_p11, %p593_p8 }
  0x23   :  { %460 = vmatprep.mubr.msk.f32.mxu0 %vm66_vm0, %v51_v19  ;;  %525 = vmatpush3.bf16.msra.mxu0 %v522_v12 }
  0x24   :  { %527 = vmatprep.subr.bf16.mxu0 %v526_v18 }
  0x25   :  { %561 = vmatpush3.bf16.msra.mxu1 %v530_v23 }
  0x26   :  { %461 = vmatmul.mubr.msk.f32.gmra.mrb[4].mxu0 %vm66_vm0, %v52_v22  ;;  %554 = vmatprep.subr.bf16.mxu1 %v534_v28 }
  0x27   :  { %463 = vmatprep.mubr.msk.f32.mxu0 %vm66_vm0, %v53_v24  ;;  %529 = vmatpush3.bf16.msra.mxu0 %v526_v18 }
  0x28   :  { %531 = vmatprep.subr.bf16.mxu0 %v530_v23 }
  0x29   :  { %562 = vmatpush3.bf16.msra.mxu1 %v534_v28 }
  0x2a   :  { %464 = vmatmul.mubr.msk.f32.gmra.mrb[6].mxu0 %vm66_vm0, %v54_v27  ;;  %555 = vmatprep.subr.bf16.mxu1 %v538_v31 }
  0x2b   :  { %533 = vmatpush3.bf16.msra.mxu0 %v530_v23 }
  0x2c   :  { %535 = vmatprep.subr.bf16.mxu0 %v534_v28 }
  0x2d   :  { %563 = vmatpush3.bf16.msra.mxu1 %v538_v31 }
  0x2e   :  { %556 = vmatprep.subr.bf16.mxu1 %v542_v34 }
  0x2f   :  { %537 = vmatpush3.bf16.msra.mxu0 %v534_v28 }
  0x30   :  { %539 = vmatprep.subr.bf16.mxu0 %v538_v31 }
  0x31   :  { %564 = vmatpush3.bf16.msra.mxu1 %v542_v34 }
  0x32   :  { %557 = vmatprep.subr.bf16.mxu1 %v546_v37 }
  0x33   :  { %541 = vmatpush3.bf16.msra.mxu0 %v538_v31 }
  0x34   :  { %543 = vmatprep.subr.bf16.mxu0 %v542_v34 }
  0x35   :  { %565 = vmatpush3.bf16.msra.mxu1 %v546_v37 }
  0x37   :  { %545 = vmatpush3.bf16.msra.mxu0 %v542_v34 }
  0x38   :  { %547 = vmatprep.subr.bf16.mxu0 %v546_v37 }
  0x3b   :  { %549 = vmatpush3.bf16.msra.mxu0 %v546_v37 }
  0xf1   :  { %v456_v39 = vpop.f32.mrb[0].mxu0 }
  0xf2   :  { %v163_v40 = vadd.f32 %v456_v39, %v400_v38  ;;  %v157_v41 = vpop.f32.mrb[1].mxu0 }
  0xf3   :  { %v158_v42 = vadd.f32 %v400_v38, %v157_v41 }
  0xf4   :  { %v197_v45 = vmax.f32 %v163_v40, 0.0 }
  0xf5   :  { %v196_v43 = vmax.f32 %v158_v42, 0.0  ;;  %v459_v44 = vpop.f32.mrb[2].mxu0 }
  0xf6   :  { %v173_v46 = vadd.f32 %v459_v44, %v400_v38  ;;  %v167_v47 = vpop.f32.mrb[3].mxu0 }
  0xf7   :  { %498 = vmatprep.mubr.f32.mxu0 %v196_v43  ;;  %v168_v48 = vadd.f32 %v400_v38, %v167_v47 }
  0xf8   :  { %499 = vmatmul.mubr.f32.vlgmr.msra.gmra.mrb[8].mxu0 %v197_v45  ;;  %v199_v51 = vmax.f32 %v173_v46, 0.0 }
  0xf9   :  { %v462_v49 = vpop.f32.mrb[4].mxu0  ;;  %v198_v50 = vmax.f32 %v168_v48, 0.0 }
  0xfa   :  { %v183_v52 = vadd.f32 %v462_v49, %v400_v38  ;;  %v177_v53 = vpop.f32.mrb[5].mxu0 }
  0xfb   :  { %v178_v54 = vadd.f32 %v400_v38, %v177_v53  ;;  %501 = vmatprep.mubr.f32.mxu1 %v198_v50 }
  0xfc   :  { %502 = vmatmul.mubr.f32.vlgmr.msra.gmra.mrb[0].mxu1 %v199_v51  ;;  %v201_v57 = vmax.f32 %v183_v52, 0.0 }
  0xfd   :  { %v200_v55 = vmax.f32 %v178_v54, 0.0  ;;  %v465_v56 = vpop.f32.mrb[6].mxu0 }
  0xfe   :  { %v193_v58 = vadd.f32 %v465_v56, %v400_v38  ;;  %v187_v59 = vpop.f32.mrb[7].mxu0 }
  0xff   :  { %v188_v60 = vadd.f32 %v400_v38, %v187_v59  ;;  %504 = vmatprep.mubr.f32.mxu1 %v200_v55 }
 0x100   :  { %505 = vmatmul.mubr.f32.gmra.mrb[2].mxu1 %v201_v57  ;;  %v203_v62 = vmax.f32 %v193_v58, 0.0 }
 0x101   :  { %v202_v61 = vmax.f32 %v188_v60, 0.0 }
 0x103   :  { %507 = vmatprep.mubr.f32.mxu1 %v202_v61 }
 0x104   :  { %508 = vmatmul.mubr.f32.gmra.mrb[4].mxu1 %v203_v62 }
 0x1cb   :  { %v500_v0 = vpop.f32.mrb[8].mxu0 }
 0x1cc   :  { %v368_v1 = vadd.f32 %v500_v0, %v409_v63  ;;  %v294_v2 = vpop.f32.mrb[9].mxu0 }
 0x1cd   :  { %v367_v3 = vadd.f32 %v409_v63, %v294_v2 }
 0x1ce   :  { %376 = vst [vmem:[#allocation6 + $0x8] sm:$0xff] %v368_v1 }
 0x1cf   :  { %375 = vst [vmem:[#allocation6] sm:$0xff] %v367_v3  ;;  %v503_v4 = vpop.f32.mrb[0].mxu1 }
 0x1d0   :  { %v370_v5 = vadd.f32 %v503_v4, %v409_v63  ;;  %v304_v6 = vpop.f32.mrb[1].mxu1 }
 0x1d1   :  { %v369_v7 = vadd.f32 %v409_v63, %v304_v6 }
 0x1d2   :  { %378 = vst [vmem:[#allocation6 + $0x18] sm:$0xff] %v370_v5 }
 0x1d3   :  { %377 = vst [vmem:[#allocation6 + $0x10] sm:$0xff] %v369_v7  ;;  %v506_v8 = vpop.f32.mrb[2].mxu1 }
 0x1d4   :  { %v372_v9 = vadd.f32 %v506_v8, %v409_v63  ;;  %v314_v10 = vpop.f32.mrb[3].mxu1 }
 0x1d5   :  { %v371_v11 = vadd.f32 %v409_v63, %v314_v10 }
 0x1d6   :  { %380 = vst [vmem:[#allocation6 + $0x28] sm:$0xff] %v372_v9 }
 0x1d7   :  { %379 = vst [vmem:[#allocation6 + $0x20] sm:$0xff] %v371_v11  ;;  %v509_v12 = vpop.f32.mrb[4].mxu1 }
 0x1d8   :  { %v374_v13 = vadd.f32 %v509_v12, %v409_v63  ;;  %v324_v14 = vpop.f32.mrb[5].mxu1 }
 0x1d9   :  { %v373_v15 = vadd.f32 %v409_v63, %v324_v14 }
 0x1da   :  { %382 = vst [vmem:[#allocation6 + $0x38] sm:$0xff] %v374_v13 }
 0x1db   :  { %381 = vst [vmem:[#allocation6 + $0x30] sm:$0xff] %v373_v15 }
 0x1dc   :  { %603 = shalt.err (!%p600_p12)
}
 0x1dd   :  { %s604_s12 = scalar_lea.hbm %s737_s5, 1024 }
 0x1de   :  { %p605_p13 = scmp.ne.s32.totalorder %s737_s5, %s604_s12  ;;  %p608_p0 = scmp.lt.u32.totalorder %s604_s12, %s737_s5 }
 0x1e0   :  { %p610_p1 = pnand %p608_p0, %p605_p13 }
 0x1e2   :  { %613 = shalt.err (!%p610_p1)
}
 0x1e3   :  { %394 = dma.vmem_to_hbm [thread:$0]  %s389_s9, 1024, %s737_s5, [#allocation5], %s619_s28, %s619_s28, %s620_s29  }
 0x1e4   :  { %616 = dma.done.wait [#allocation5], 1024  }
 0x1e5   :  { %617 = vsyncadd [#allocation5], 4294966272 }
 0x1e6   :  { %398 = vsyncpa [#allocation4], 1 }
 0x1e7   :  { %399 = vsyncpa [#allocation5], 1 }

</bundles_post_ra>
